<compile_context>
chip_gen: v7x
topology: tpu7x:2x2x1
jax: 0.10.0
libtpu: 0.0.40
codegen_flags: <defaults>
</compile_context>

<pallas_src>
import jax
import jax.numpy as jnp
from jax.experimental import pallas as pl
from jax.experimental.pallas import tpu as pltpu

LANES = 128  # lane width of a vreg


def _ipow(v, k):
    """Integer power k >= 1 as a repeated-multiply chain (VPU only)."""
    r = v
    for _ in range(k - 1):
        r = r * v
    return r


# -----------------------------------------------------------------------------
# Pallas kernel
# -----------------------------------------------------------------------------
def make_tr_kernel(degree, knots):
    if degree == 0 or not isinstance(degree, int):
        raise ValueError("Degree should be a positive int (matches Truncated_power).")
    knots = tuple(float(k) for k in knots)
    num_basis = degree + 1 + len(knots)

    def kernel(w_ref, t_ref, o_ref):
        # w_ref: SMEM [num_basis] f32 (scalar-prefetched, resident across grid)
        # t_ref / o_ref: VMEM [tile_rows, 128] f32 (lane-dense)
        x = t_ref[...]

        # polynomial part: w0 * 1 + w1 * x + ... + w_degree * x^degree
        acc = w_ref[0] * jnp.ones_like(x)
        p = x
        acc = acc + w_ref[1] * p
        for i in range(2, degree + 1):
            p = p * x
            acc = acc + w_ref[i] * p

        # truncated-power part: w_j * relu(x - knot)^degree
        for j in range(degree + 1, num_basis):
            if degree == 1:
                # mirrors the PyTorch indexing exactly (knots[j - degree]); the
                # original code can IndexError here for the last basis — we keep
                # the same behaviour rather than silently "fixing" it.
                # TODO(synk): degree==1 knot indexing follows the (buggy) PyTorch source.
                knot = knots[j - degree]
            else:
                knot = knots[j - degree - 1]
            r = jnp.maximum(x - knot, 0.0)
            acc = acc + w_ref[j] * _ipow(r, degree)

        o_ref[...] = acc

    return kernel


# -----------------------------------------------------------------------------
# wrapper: pad/reshape batch to a lane-dense [rows, 128] slab, tile rows
# -----------------------------------------------------------------------------
def tr_forward(t, weight, degree, knots, tile_rows=512):
    t_flat = t.reshape(-1).astype(jnp.float32)          # x.squeeze() in torch
    n = t_flat.shape[0]

    rows = pl.cdiv(n, LANES)
    rows8 = pl.cdiv(rows, 8) * 8                        # (8,128) tiling constraint
    tile_rows = max(8, min(int(tile_rows), rows8))
    tile_rows = pl.cdiv(tile_rows, 8) * 8
    rows_padded = pl.cdiv(rows8, tile_rows) * tile_rows
    n_padded = rows_padded * LANES

    t_pad = jnp.pad(t_flat, (0, n_padded - n))
    t2 = t_pad.reshape(rows_padded, LANES)
    w = weight.reshape(-1).astype(jnp.float32)

    kernel = make_tr_kernel(degree, knots)
    grid = (rows_padded // tile_rows,)

    out2 = pl.pallas_call(
        kernel,
        out_shape=jax.ShapeDtypeStruct((rows_padded, LANES), jnp.float32),
        grid_spec=pltpu.PrefetchScalarGridSpec(
            num_scalar_prefetch=1,                      # weight -> SMEM, resident
            grid=grid,
            in_specs=[pl.BlockSpec((tile_rows, LANES), lambda i, w_ref: (i, 0))],
            out_specs=pl.BlockSpec((tile_rows, LANES), lambda i, w_ref: (i, 0)),
        ),
        compiler_params=pltpu.CompilerParams(
            dimension_semantics=("parallel",),          # megacore on v7x
        ),
    )(w, t2)

    return out2.reshape(-1)[:n]                          # [N], matches torch


# -----------------------------------------------------------------------------
# pure-JAX reference (mirrors Truncated_power.forward + TR.forward)
# -----------------------------------------------------------------------------
def tr_reference(t, weight, degree, knots):
    x = t.reshape(-1).astype(jnp.float32)
    num_basis = degree + 1 + len(knots)
    cols = []
    for i in range(num_basis):
        if i <= degree:
            cols.append(jnp.ones_like(x) if i == 0 else x ** i)
        elif degree == 1:
            cols.append(jnp.maximum(x - knots[i - degree], 0.0))
        else:
            cols.append(jnp.maximum(x - knots[i - degree - 1], 0.0) ** degree)
    basis = jnp.stack(cols, axis=1)                      # [N, num_basis]
    return basis @ weight.reshape(-1).astype(jnp.float32)


# -----------------------------------------------------------------------------
if __name__ == "__main__":
    # small, shape-consistent config (data assumed in [0,1])
    degree = 2
    knots = [1.0 / 3.0, 2.0 / 3.0]
    d = degree + 1 + len(knots)                          # num_of_basis = 5
    N = 8

    key = jax.random.PRNGKey(0)
    kw, kt = jax.random.split(key)
    weight = jax.random.uniform(kw, (d,), jnp.float32)   # torch.rand(self.d)
    t = jax.random.uniform(kt, (N,), jnp.float32, 0.0, 1.0)

    out = tr_forward(t, weight, degree, knots)
    out = jax.block_until_ready(out)

    ref = tr_reference(t, weight, degree, knots)
    assert out.shape == (N,)
    assert jnp.allclose(out, ref, rtol=1e-5, atol=1e-5), (out, ref)

    print("KERNEL_OK")
</pallas_src>

<mosaic_0001>
module attributes {stable_mosaic.version = 11 : i64} {
  func.func @kernel(%arg0: i32, %arg1: memref<5xf32, #tpu.memory_space<smem>>, %arg2: memref<8x128xf32, #tpu.memory_space<vmem>>, %arg3: memref<8x128xf32, #tpu.memory_space<vmem>>) attributes {dimension_semantics = [#tpu.dimension_semantics<parallel>], iteration_bounds = array<i64: 1>, scalar_prefetch = 1 : i64, scratch_operands = 0 : i64, tpu.core_type = #tpu.core_type<tc>, window_params = [{transform_indices = @transform_0, window_bounds = array<i64: 8, 128>}, {transform_indices = @transform_1, window_bounds = array<i64: 8, 128>}]} {
    %c0 = arith.constant 0 : index
    %c0_0 = arith.constant 0 : index
    %0 = vector.load %arg2[%c0, %c0_0] : memref<8x128xf32, #tpu.memory_space<vmem>>, vector<8x128xf32>
    %c0_1 = arith.constant 0 : index
    %1 = memref.load %arg1[%c0_1] : memref<5xf32, #tpu.memory_space<smem>>
    %cst = arith.constant 1.000000e+00 : f32
    %2 = vector.broadcast %cst : f32 to vector<8x128xf32>
    %3 = vector.broadcast %1 : f32 to vector<8x128xf32>
    %4 = arith.mulf %3, %2 : vector<8x128xf32>
    %c1 = arith.constant 1 : index
    %5 = memref.load %arg1[%c1] : memref<5xf32, #tpu.memory_space<smem>>
    %6 = vector.broadcast %5 : f32 to vector<8x128xf32>
    %7 = arith.mulf %6, %0 : vector<8x128xf32>
    %8 = arith.addf %4, %7 : vector<8x128xf32>
    %9 = arith.mulf %0, %0 : vector<8x128xf32>
    %c2 = arith.constant 2 : index
    %10 = memref.load %arg1[%c2] : memref<5xf32, #tpu.memory_space<smem>>
    %11 = vector.broadcast %10 : f32 to vector<8x128xf32>
    %12 = arith.mulf %11, %9 : vector<8x128xf32>
    %13 = arith.addf %8, %12 : vector<8x128xf32>
    %cst_2 = arith.constant 0.333333343 : f32
    %14 = vector.broadcast %cst_2 : f32 to vector<8x128xf32>
    %15 = arith.subf %0, %14 : vector<8x128xf32>
    %cst_3 = arith.constant 0.000000e+00 : f32
    %16 = vector.broadcast %cst_3 : f32 to vector<8x128xf32>
    %17 = arith.maximumf %15, %16 : vector<8x128xf32>
    %c3 = arith.constant 3 : index
    %18 = memref.load %arg1[%c3] : memref<5xf32, #tpu.memory_space<smem>>
    %19 = arith.mulf %17, %17 : vector<8x128xf32>
    %20 = vector.broadcast %18 : f32 to vector<8x128xf32>
    %21 = arith.mulf %20, %19 : vector<8x128xf32>
    %22 = arith.addf %13, %21 : vector<8x128xf32>
    %cst_4 = arith.constant 0.666666686 : f32
    %23 = vector.broadcast %cst_4 : f32 to vector<8x128xf32>
    %24 = arith.subf %0, %23 : vector<8x128xf32>
    %cst_5 = arith.constant 0.000000e+00 : f32
    %25 = vector.broadcast %cst_5 : f32 to vector<8x128xf32>
    %26 = arith.maximumf %24, %25 : vector<8x128xf32>
    %c4 = arith.constant 4 : index
    %27 = memref.load %arg1[%c4] : memref<5xf32, #tpu.memory_space<smem>>
    %28 = arith.mulf %26, %26 : vector<8x128xf32>
    %29 = vector.broadcast %27 : f32 to vector<8x128xf32>
    %30 = arith.mulf %29, %28 : vector<8x128xf32>
    %31 = arith.addf %22, %30 : vector<8x128xf32>
    %c0_6 = arith.constant 0 : index
    %c0_7 = arith.constant 0 : index
    %32 = vector.load %arg3[%c0_6, %c0_7] : memref<8x128xf32, #tpu.memory_space<vmem>>, vector<8x128xf32>
    tpu.vector_store %arg3[%c0_6, %c0_7], %31 {strides = array<i32>} : memref<8x128xf32, #tpu.memory_space<vmem>>, vector<8x128xf32>,
    return
  }
  func.func @transform_0(%arg0: i32, %arg1: memref<5xf32, #tpu.memory_space<smem>>) -> (i32, i32) {
    %c0_i32 = arith.constant 0 : i32
    %c0_i32_0 = arith.constant 0 : i32
    return %arg0, %c0_i32 : i32, i32
  }
  func.func @transform_1(%arg0: i32, %arg1: memref<5xf32, #tpu.memory_space<smem>>) -> (i32, i32) {
    %c0_i32 = arith.constant 0 : i32
    %c0_i32_0 = arith.constant 0 : i32
    return %arg0, %c0_i32 : i32, i32
  }
}

</mosaic_0001>

<bundles_post_ra>
// kernel: tpu_custom_call.1
= control target key start
LH: loop header
LB: loop body
LE: loop exit
PB: predicated region body
PF: predicated region fallthrough
CT: control target
= control target key end

     0   :  { %s191_s0 = inlined_call_operand.hbm [shape: f32[5], index: 0, kind: input, shape index: {}]   ;;  %s192_s1 = inlined_call_operand.hbm [shape: f32[8,128], index: 1, kind: input, shape index: {}]   ;;  %s193_s2 = inlined_call_operand.hbm [shape: f32[8,128], index: 2, kind: output, shape index: {}]  }
   0x1   :  { %s77_s11 = scalar_lea.hbm %s191_s0, 16 }
   0x2   :  { %p78_p0 = scmp.ne.s32.totalorder %s191_s0, %s77_s11  ;;  %p81_p1 = scmp.lt.u32.totalorder %s77_s11, %s191_s0 }
   0x4   :  { %p83_p2 = pnand %p81_p1, %p78_p0 }
   0x6   :  { %86 = shalt.err (!%p83_p2)  }
   0x7   :  { %s137_s16 = smov [#allocation3]  }
   0x8   :  { %8 = dma.hbm_to_smem %s191_s0, 16, %s137_s16, [#allocation2] }
   0x9   :  { %131 = dma.done.wait [#allocation2], 16 }
   0xa   :  { %132 = vsyncadd [#allocation2], 4294967280 }
   0xb   :  { %10 = sfence }
   0xc   :  { %11 = vsyncpa [#allocation5], 0 }
   0xd   :  { %12 = vsyncpa [#allocation6], 0  ;;  %s138_s19 = smov [#allocation4]   ;;  %s87_s23 = scalar_lea.hbm %s192_s1, 128 }
   0xe   :  { %s19_s20 = sshll.u32 %s138_s19, 4  ;;  %p88_p3 = scmp.ne.s32.totalorder %s192_s1, %s87_s23  ;;  %s20_s20 = int_to_ptr.vmem [resolvable:$true] %s19_s20 }
   0xf   :  { %p91_p4 = scmp.lt.u32.totalorder %s87_s23, %s192_s1 }
  0x11   :  { %p93_p5 = pnand %p91_p4, %p88_p3 }
  0x13   :  { %96 = shalt.err (!%p93_p5)
}
  0x14   :  { %s97_s0 = scalar_lea.vmem %s20_s20, 128  ;;  %p102_p7 = scmp.lt.s32.totalorder %s20_s20, %s20_s20 }
  0x15   :  { %p98_p6 = scmp.ne.s32.totalorder %s20_s20, %s97_s0  ;;  %p103_p8 = scmp.lt.s32.totalorder %s97_s0, %s97_s0 }
  0x17   :  { %p104_p9 = por %p103_p8, %p102_p7 }
  0x19   :  { %p105_p10 = pnand %p104_p9, %p98_p6 }
  0x1b   :  { %108 = shalt.err (!%p105_p10)
}
  0x1c   :  { %22 = dma.hbm_to_vmem [thread:$0]  %s192_s1, 128, %s20_s20, [#allocation5]  }
  0x1d   :  { %133 = dma.done.wait [#allocation5], 128  }
  0x1e   :  { %134 = vsyncadd [#allocation5], 4294967168  ;;  %s27_s30 = sld [smem:[#allocation3]]  ;;  %s68_s3 = sld [smem:[#allocation3 + $0x1]]  ;;  %v26_v0 = vld [vmem:[#allocation4] sm:$0xff] }
  0x1f   :  { %s69_s4 = sld [smem:[#allocation3 + $0x2]]  ;;  %s71_s5 = sld [smem:[#allocation3 + $0x3]]  ;;  %v33_v4 = vmul.f32 %v26_v0, %v26_v0  ;;  %v70_v6 = vadd.f32 -0.33333334, %v26_v0  ;;  %v72_v7 = vadd.f32 -0.6666667, %v26_v0 }
  0x20   :  { %s73_s6 = sld [smem:[#allocation3 + $0x4]]  ;;  %s139_s1 = smov [#allocation7]  }
  0x21   :  { %v39_v10 = vmax.f32 %v70_v6, 0.0  ;;  %v46_v12 = vmax.f32 %v72_v7, 0.0  ;;  %s59_s7 = sshll.u32 %s139_s1, 4  ;;  %s60_s7 = int_to_ptr.vmem [resolvable:$true] %s59_s7 }
  0x22   :  { %s109_s8 = scalar_lea.vmem %s60_s7, 128  ;;  %p114_p12 = scmp.lt.s32.totalorder %s60_s7, %s60_s7 }
  0x23   :  { %v41_v14 = vmul.f32 %v39_v10, %v39_v10  ;;  %v48_v16 = vmul.f32 %v46_v12, %v46_v12  ;;  %p110_p11 = scmp.ne.s32.totalorder %s60_s7, %s109_s8  ;;  %p115_p13 = scmp.lt.s32.totalorder %s109_s8, %s109_s8 }
  0x24   :  { %v28_v1 = vstv %s27_s30  ;;  %v30_v2 = vstv %s68_s3 }
  0x25   :  { %v31_v3 = vmul.f32 %v30_v2, %v26_v0  ;;  %v35_v5 = vstv %s69_s4  ;;  %v42_v11 = vstv %s71_s5  ;;  %p116_p0 = por %p115_p13, %p114_p12 }
  0x26   :  { %v36_v9 = vmul.f32 %v35_v5, %v33_v4  ;;  %v49_v15 = vstv %s73_s6  ;;  %v43_v17 = vmul.f32 %v42_v11, %v41_v14 }
  0x27   :  { %v32_v8 = vadd.f32 %v31_v3, %v28_v1  ;;  %v50_v18 = vmul.f32 %v49_v15, %v48_v16  ;;  %p117_p1 = pnand %p116_p0, %p110_p11 }
  0x29   :  { %v37_v13 = vadd.f32 %v36_v9, %v32_v8 }
  0x2b   :  { %v44_v19 = vadd.f32 %v43_v17, %v37_v13 }
  0x2d   :  { %v51_v20 = vadd.f32 %v50_v18, %v44_v19 }
  0x2f   :  { %52 = vst [vmem:[#allocation7] sm:$0xff] %v51_v20 }
  0x30   :  { %120 = shalt.err (!%p117_p1)
}
  0x31   :  { %s121_s11 = scalar_lea.hbm %s193_s2, 128 }
  0x32   :  { %p122_p2 = scmp.ne.s32.totalorder %s193_s2, %s121_s11  ;;  %p125_p3 = scmp.lt.u32.totalorder %s121_s11, %s193_s2 }
  0x34   :  { %p127_p4 = pnand %p125_p3, %p122_p2 }
  0x36   :  { %130 = shalt.err (!%p127_p4)
}
  0x37   :  { %62 = dma.vmem_to_hbm [thread:$0]  %s60_s7, 128, %s193_s2, [#allocation6]  }
  0x38   :  { %135 = dma.done.wait [#allocation6], 128  }
  0x39   :  { %136 = vsyncadd [#allocation6], 4294967168 }
  0x3a   :  { %66 = vsyncpa [#allocation5], 1 }
  0x3b   :  { %67 = vsyncpa [#allocation6], 1 }

</bundles_post_ra>
